<compile_context>
chip_gen: v5e
topology: v5e:2x2
jax: 0.10.0
libtpu: 0.0.40
codegen_flags: <defaults>
</compile_context>

<pallas_src>
import functools
import math

import jax
import jax.numpy as jnp
from jax import lax
from jax.experimental import pallas as pl
from jax.experimental.pallas import tpu as pltpu


# ---------------------------------------------------------------------------
# Kernels
# ---------------------------------------------------------------------------

def _as_pred(mask):
    """bool mask used directly; integer masks compared against zero."""
    return mask if mask.dtype == jnp.bool_ else (mask != 0)


def _sdpa_kernel(q_ref, k_ref, v_ref, mask_ref, ctx_ref, attn_ref, *, scale):
    """One (batch, head, q-tile): full softmax; writes ctx tile + attn tile."""
    q = q_ref[0, 0]          # (TQ, D) compute dtype
    k = k_ref[0, 0]          # (Lk, D)
    v = v_ref[0, 0]          # (Lk, D)
    mask = mask_ref[0, 0]    # (TQ, Lk) bool/int8

    # Fold 1/sqrt(d_k) into Q: O(TQ*D) instead of O(TQ*Lk).
    q = q * jnp.asarray(scale, dtype=q.dtype)

    # scores = Q @ K^T, contracting the last dim of BOTH operands (no K
    # transpose / relayout); f32 accumulation on the MXU.
    scores = lax.dot_general(
        q, k,
        dimension_numbers=(((1,), (1,)), ((), ())),
        preferred_element_type=jnp.float32,
    )
    scores = jnp.where(_as_pred(mask), jnp.float32(-1e9), scores)

    # Numerically stable softmax over keys, f32 throughout.  Exact reciprocal
    # (only TQ divisions): the approximate EUP reciprocal was outside the
    # reference tolerance.
    m = jnp.max(scores, axis=-1, keepdims=True)
    e = jnp.exp(scores - m)
    denom = jnp.sum(e, axis=-1, keepdims=True)
    attn = e * (1.0 / denom)

    # context = attn @ V (probabilities cast to the MXU compute dtype,
    # accumulation stays f32).
    ctx = jnp.dot(attn.astype(v.dtype), v, preferred_element_type=jnp.float32)

    ctx_ref[0, 0] = ctx.astype(ctx_ref.dtype)
    attn_ref[0, 0] = attn.astype(attn_ref.dtype)


def _flash_kernel(q_ref, k_ref, v_ref, mask_ref, ctx_ref,
                  m_sc, l_sc, acc_sc, *, scale):
    """Online-softmax (flash) path: context only, attn never hits HBM."""
    ki = pl.program_id(3)

    @pl.when(ki == 0)
    def _():
        m_sc[...] = jnp.full(m_sc.shape, -jnp.inf, jnp.float32)
        l_sc[...] = jnp.zeros(l_sc.shape, jnp.float32)
        acc_sc[...] = jnp.zeros(acc_sc.shape, jnp.float32)

    q = q_ref[0, 0] * jnp.asarray(scale, dtype=q_ref.dtype)
    k = k_ref[0, 0]
    v = v_ref[0, 0]
    mask = mask_ref[0, 0]

    s = lax.dot_general(
        q, k,
        dimension_numbers=(((1,), (1,)), ((), ())),
        preferred_element_type=jnp.float32,
    )
    s = jnp.where(_as_pred(mask), jnp.float32(-1e9), s)

    m_prev = m_sc[...]
    m_new = jnp.maximum(m_prev, jnp.max(s, axis=-1, keepdims=True))
    alpha = jnp.exp(m_prev - m_new)
    p = jnp.exp(s - m_new)
    l_sc[...] = alpha * l_sc[...] + jnp.sum(p, axis=-1, keepdims=True)
    acc_sc[...] = alpha * acc_sc[...] + jnp.dot(
        p.astype(v.dtype), v, preferred_element_type=jnp.float32)
    m_sc[...] = m_new

    @pl.when(ki == pl.num_programs(3) - 1)
    def _():
        ctx_ref[0, 0] = (acc_sc[...] * (1.0 / l_sc[...])).astype(ctx_ref.dtype)


# ---------------------------------------------------------------------------
# Wrapper
# ---------------------------------------------------------------------------

def _vmem_capacity_bytes():
    """Physical VMEM of the attached chip; conservative (v7x) fallback."""
    try:
        cap = int(pltpu.get_tpu_info().vmem_capacity_bytes)
        if cap > 0:
            return cap
    except Exception:
        pass
    return 64 * 1024 * 1024


def _tile_candidates(n):
    """Descending MXU-friendly tile sizes dividing n (biased toward >=256)."""
    cands = [c for c in (512, 256, 128, 64, 32, 16, 8) if c <= n and n % c == 0]
    return cands if cands else [n]   # full extent is always a legal block dim


def scaled_dot_product_attention(Q, K, V, attn_mask, d_k, *,
                                 compute_dtype=jnp.bfloat16,
                                 q_tile=None, k_tile=None,
                                 return_attn=True):
    """Masked scaled dot-product attention (Pallas TPU).

    Q, K, V:  [B, H, L, d_k].  attn_mask: [B, H or 1, Lq, Lk]; True/nonzero
    means "mask out".  Returns (context, attn) like the PyTorch module; with
    return_attn=False an online-softmax kernel returns (context, None).
    compute_dtype is the MXU input dtype (bf16 default, f32 accumulation and
    f32 softmax statistics always); pass jnp.float32 for exact f32.
    """
    B, H, Lq, D = Q.shape
    Lk = K.shape[2]
    out_dtype = jnp.dtype(Q.dtype)
    cdtype = jnp.dtype(compute_dtype) if compute_dtype is not None else out_dtype

    if attn_mask.ndim != 4 or attn_mask.shape[0] != B or attn_mask.shape[2:] != (Lq, Lk):
        raise ValueError(f"attn_mask must be [B, H|1, Lq, Lk]; got {attn_mask.shape}")
    MH = attn_mask.shape[1]
    if MH not in (1, H):
        raise ValueError(f"attn_mask head dim must be 1 or {H}; got {MH}")
    mask_h = (lambda h: h) if MH == H else (lambda h: 0)

    Qc = Q.astype(cdtype)
    Kc = K.astype(cdtype)
    Vc = V.astype(cdtype)
    # Mask travels at its native 1-byte width (bool / int8): no extra
    # O(B*H*Lq*Lk) conversion pass unless it arrives wider than 1 byte.
    mask = attn_mask if jnp.dtype(attn_mask.dtype).itemsize == 1 \
        else attn_mask.astype(jnp.int8)

    scale = 1.0 / math.sqrt(d_k)
    cap = _vmem_capacity_bytes()
    budget = (cap * 3) // 4            # headroom for compiler scratch / sems

    c_bytes = cdtype.itemsize
    o_bytes = out_dtype.itemsize
    mk_bytes = jnp.dtype(mask.dtype).itemsize

    flops = int(4 * B * H * Lq * Lk * D)
    transc = int(B * H * Lq * Lk)
    in_bytes = int((Qc.size + Kc.size + Vc.size) * c_bytes + mask.size * mk_bytes)

    # ---------------------------------------------------------------- flash
    if not return_attn:
        def _flash_bytes(tq, tk):
            return (2 * tq * D * (c_bytes + o_bytes)       # Q tile + ctx tile
                    + 2 * 2 * tk * D * c_bytes             # K, V tiles
                    + 2 * tq * tk * mk_bytes               # mask tile
                    + 4 * tq * (D + 2))                    # m/l/acc scratch

        qcands = [q_tile] if q_tile is not None else _tile_candidates(Lq)
        kcands = [k_tile] if k_tile is not None else _tile_candidates(Lk)
        chosen = None
        for tq in qcands:
            for tk in kcands:
                if _flash_bytes(tq, tk) <= budget:
                    chosen = (tq, tk)
                    break
            if chosen is not None:
                break
        if chosen is None:
            chosen = (qcands[-1], kcands[-1])
        TQ, TK = chosen
        assert Lq % TQ == 0 and Lk % TK == 0
        n_q, n_k = Lq // TQ, Lk // TK
        vmem_limit = int(min(cap, max(_flash_bytes(TQ, TK) + (8 << 20), 32 << 20)))

        ctx = pl.pallas_call(
            functools.partial(_flash_kernel, scale=scale),
            out_shape=jax.ShapeDtypeStruct((B, H, Lq, D), out_dtype),
            grid=(B, H, n_q, n_k),
            in_specs=[
                pl.BlockSpec((1, 1, TQ, D), lambda b, h, qi, ki: (b, h, qi, 0)),
                pl.BlockSpec((1, 1, TK, D), lambda b, h, qi, ki: (b, h, ki, 0)),
                pl.BlockSpec((1, 1, TK, D), lambda b, h, qi, ki: (b, h, ki, 0)),
                pl.BlockSpec((1, 1, TQ, TK),
                             lambda b, h, qi, ki: (b, mask_h(h), qi, ki)),
            ],
            out_specs=pl.BlockSpec((1, 1, TQ, D), lambda b, h, qi, ki: (b, h, qi, 0)),
            scratch_shapes=[
                pltpu.VMEM((TQ, 1), jnp.float32),
                pltpu.VMEM((TQ, 1), jnp.float32),
                pltpu.VMEM((TQ, D), jnp.float32),
            ],
            compiler_params=pltpu.CompilerParams(
                dimension_semantics=("parallel", "parallel", "parallel", "arbitrary"),
                vmem_limit_bytes=vmem_limit,
            ),
            cost_estimate=pl.CostEstimate(
                flops=flops, transcendentals=transc,
                bytes_accessed=int(in_bytes + B * H * Lq * D * o_bytes),
            ),
        )(Qc, Kc, Vc, mask)
        return ctx, None

    # ------------------------------------------------------- full softmax
    kv_slab = 2 * Lk * D * c_bytes                     # one K+V buffer
    kv_single = (2 * kv_slab) > (budget // 3)          # single-buffer big K/V
    kv_bytes = (1 if kv_single else 2) * kv_slab

    def _q_bytes(tq):   # double-buffered per-q-tile windows: Q, mask, ctx, attn
        return 2 * tq * (D * c_bytes + Lk * mk_bytes + D * o_bytes + Lk * o_bytes)

    if q_tile is not None:
        TQ = q_tile
        assert Lq % TQ == 0, "q_tile must divide Lq"
    else:
        TQ = None
        for cand in _tile_candidates(Lq):
            if kv_bytes + _q_bytes(cand) <= budget:
                TQ = cand
                break
        if TQ is None:
            TQ = _tile_candidates(Lq)[-1]   # best effort (smallest tile)
    n_q = Lq // TQ
    vmem_limit = int(min(cap, max(kv_bytes + _q_bytes(TQ) + (8 << 20), 32 << 20)))

    # K/V block index is constant across the inner qi axis; double-buffering
    # only hides the (b, h)-boundary fetch, so drop to a single buffer when
    # the slabs are large (decisive inside v7x's 64 MiB).
    kv_kwargs = dict(pipeline_mode=pl.Buffered(1)) if kv_single else {}
    k_spec = pl.BlockSpec((1, 1, Lk, D), lambda b, h, qi: (b, h, 0, 0), **kv_kwargs)
    v_spec = pl.BlockSpec((1, 1, Lk, D), lambda b, h, qi: (b, h, 0, 0), **kv_kwargs)

    ctx, attn = pl.pallas_call(
        functools.partial(_sdpa_kernel, scale=scale),
        out_shape=(
            jax.ShapeDtypeStruct((B, H, Lq, D), out_dtype),
            jax.ShapeDtypeStruct((B, H, Lq, Lk), out_dtype),
        ),
        grid=(B, H, n_q),
        in_specs=[
            pl.BlockSpec((1, 1, TQ, D), lambda b, h, qi: (b, h, qi, 0)),
            k_spec,
            v_spec,
            pl.BlockSpec((1, 1, TQ, Lk), lambda b, h, qi: (b, mask_h(h), qi, 0)),
        ],
        out_specs=(
            pl.BlockSpec((1, 1, TQ, D), lambda b, h, qi: (b, h, qi, 0)),
            pl.BlockSpec((1, 1, TQ, Lk), lambda b, h, qi: (b, h, qi, 0)),
        ),
        compiler_params=pltpu.CompilerParams(
            # qi "arbitrary": v7x's two TensorCores split over B*H so each
            # keeps its K/V slab resident; no-op on single-TC v5e/v6e.
            dimension_semantics=("parallel", "parallel", "arbitrary"),
            vmem_limit_bytes=vmem_limit,
        ),
        cost_estimate=pl.CostEstimate(
            flops=flops, transcendentals=transc,
            bytes_accessed=int(in_bytes
                               + B * H * Lq * D * o_bytes
                               + B * H * Lq * Lk * o_bytes),
        ),
    )(Qc, Kc, Vc, mask)
    return ctx, attn


# ---------------------------------------------------------------------------
# Reference + self-test
# ---------------------------------------------------------------------------

def _reference(Q, K, V, attn_mask, d_k):
    scores = jnp.einsum("bhqd,bhkd->bhqk", Q, K,
                        precision=lax.Precision.HIGHEST) / jnp.sqrt(jnp.float32(d_k))
    scores = jnp.where(attn_mask, jnp.float32(-1e9), scores)
    attn = jax.nn.softmax(scores, axis=-1)
    ctx = jnp.einsum("bhqk,bhkd->bhqd", attn, V, precision=lax.Precision.HIGHEST)
    return ctx, attn


if __name__ == "__main__":
    key = jax.random.PRNGKey(0)
    B, H, Lq, Lk, d_k = 2, 2, 8, 8, 32

    kq, kk, kv = jax.random.split(key, 3)
    Q = jax.random.normal(kq, (B, H, Lq, d_k), dtype=jnp.float32)
    K = jax.random.normal(kk, (B, H, Lk, d_k), dtype=jnp.float32)
    V = jax.random.normal(kv, (B, H, Lk, d_k), dtype=jnp.float32)
    # Padding-style mask: last 2 keys masked out for every query (True = mask).
    attn_mask = jnp.broadcast_to(
        jnp.arange(Lk)[None, None, None, :] >= (Lk - 2), (B, H, Lq, Lk))

    ctx_ref, attn_ref = _reference(Q, K, V, attn_mask, d_k)

    # Exact f32 compute path.
    ctx32, attn32 = scaled_dot_product_attention(
        Q, K, V, attn_mask, d_k, compute_dtype=jnp.float32)
    jax.block_until_ready((ctx32, attn32))
    assert ctx32.shape == (B, H, Lq, d_k) and attn32.shape == (B, H, Lq, Lk)
    assert jnp.allclose(ctx32, ctx_ref, atol=5e-3, rtol=5e-3)
    assert jnp.allclose(attn32, attn_ref, atol=5e-3, rtol=5e-3)
    assert float(jnp.max(attn32[..., Lk - 2:])) < 1e-6   # masked keys ~ zero

    # Default path: bf16 MXU inputs, f32 accumulation / softmax stats.
    ctx_bf, attn_bf = scaled_dot_product_attention(Q, K, V, attn_mask, d_k)
    jax.block_until_ready((ctx_bf, attn_bf))
    assert ctx_bf.shape == (B, H, Lq, d_k) and attn_bf.shape == (B, H, Lq, Lk)
    assert jnp.allclose(ctx_bf, ctx_ref, atol=5e-2, rtol=5e-2)
    assert jnp.allclose(attn_bf, attn_ref, atol=5e-2, rtol=5e-2)
    assert float(jnp.max(attn_bf[..., Lk - 2:])) < 1e-6

    # Flash (online-softmax) path: context only, attn never materialized.
    ctx_fl, attn_none = scaled_dot_product_attention(
        Q, K, V, attn_mask, d_k, compute_dtype=jnp.float32, return_attn=False)
    jax.block_until_ready(ctx_fl)
    assert attn_none is None
    assert jnp.allclose(ctx_fl, ctx_ref, atol=5e-3, rtol=5e-3)

    print("KERNEL_OK")
</pallas_src>

<mosaic_0001>
module attributes {stable_mosaic.version = 11 : i64} {
  func.func @_sdpa_kernel(%arg0: i32, %arg1: i32, %arg2: i32, %arg3: memref<1x1x8x32xf32, #tpu.memory_space<vmem>>, %arg4: memref<1x1x8x32xf32, #tpu.memory_space<vmem>>, %arg5: memref<1x1x8x32xf32, #tpu.memory_space<vmem>>, %arg6: memref<1x1x8x8xi32, #tpu.memory_space<vmem>>, %arg7: memref<1x1x8x32xf32, #tpu.memory_space<vmem>>, %arg8: memref<1x1x8x8xf32, #tpu.memory_space<vmem>>) attributes {dimension_semantics = [#tpu.dimension_semantics<parallel>, #tpu.dimension_semantics<parallel>, #tpu.dimension_semantics<arbitrary>], iteration_bounds = array<i64: 2, 2, 1>, scalar_prefetch = 0 : i64, scratch_operands = 0 : i64, tpu.core_type = #tpu.core_type<tc>, window_params = [{transform_indices = @transform_0, window_bounds = array<i64: 1, 1, 8, 32>}, {transform_indices = @transform_1, window_bounds = array<i64: 1, 1, 8, 32>}, {transform_indices = @transform_2, window_bounds = array<i64: 1, 1, 8, 32>}, {transform_indices = @transform_3, window_bounds = array<i64: 1, 1, 8, 8>}, {transform_indices = @transform_4, window_bounds = array<i64: 1, 1, 8, 32>}, {transform_indices = @transform_5, window_bounds = array<i64: 1, 1, 8, 8>}]} {
    %c0 = arith.constant 0 : index
    %c0_0 = arith.constant 0 : index
    %c0_1 = arith.constant 0 : index
    %c0_2 = arith.constant 0 : index
    %0 = vector.load %arg3[%c0, %c0_0, %c0_1, %c0_2] : memref<1x1x8x32xf32, #tpu.memory_space<vmem>>, vector<1x1x8x32xf32>
    %1 = vector.shape_cast %0 : vector<1x1x8x32xf32> to vector<8x32xf32>
    %c0_3 = arith.constant 0 : index
    %c0_4 = arith.constant 0 : index
    %c0_5 = arith.constant 0 : index
    %c0_6 = arith.constant 0 : index
    %2 = vector.load %arg4[%c0_3, %c0_4, %c0_5, %c0_6] : memref<1x1x8x32xf32, #tpu.memory_space<vmem>>, vector<1x1x8x32xf32>
    %3 = vector.shape_cast %2 : vector<1x1x8x32xf32> to vector<8x32xf32>
    %c0_7 = arith.constant 0 : index
    %c0_8 = arith.constant 0 : index
    %c0_9 = arith.constant 0 : index
    %c0_10 = arith.constant 0 : index
    %4 = vector.load %arg5[%c0_7, %c0_8, %c0_9, %c0_10] : memref<1x1x8x32xf32, #tpu.memory_space<vmem>>, vector<1x1x8x32xf32>
    %5 = vector.shape_cast %4 : vector<1x1x8x32xf32> to vector<8x32xf32>
    %c0_11 = arith.constant 0 : index
    %c0_12 = arith.constant 0 : index
    %c0_13 = arith.constant 0 : index
    %c0_14 = arith.constant 0 : index
    %6 = vector.load %arg6[%c0_11, %c0_12, %c0_13, %c0_14] : memref<1x1x8x8xi32, #tpu.memory_space<vmem>>, vector<1x1x8x8xi32>
    %7 = vector.shape_cast %6 : vector<1x1x8x8xi32> to vector<8x8xi32>
    %cst = arith.constant dense<0> : vector<8x8xi32>
    %8 = arith.cmpi ne, %7, %cst : vector<8x8xi32>
    %cst_15 = arith.constant 0.176776692 : f32
    %9 = vector.broadcast %cst_15 : f32 to vector<8x32xf32>
    %10 = arith.mulf %1, %9 : vector<8x32xf32>
    %cst_16 = arith.constant dense<0.000000e+00> : vector<8x8xf32>
    %11 = tpu.matmul %10, %3, %cst_16 {dimension_numbers = #tpu.dot_dimension_numbers<[1], [1], [0], [0], [0, 0, 1, 0], [], []>} : vector<8x32xf32>, vector<8x32xf32>, vector<8x8xf32> -> vector<8x8xf32>
    %cst_17 = arith.constant -1.000000e+09 : f32
    %12 = vector.broadcast %cst_17 : f32 to vector<8x8xf32>
    %13 = arith.select %8, %12, %11 : vector<8x8xi1>, vector<8x8xf32>
    %cst_18 = arith.constant dense<0xFF800000> : vector<8xf32>
    %14 = vector.multi_reduction <maximumf>, %13, %cst_18 [1] : vector<8x8xf32> to vector<8xf32>
    %15 = vector.shape_cast %14 : vector<8xf32> to vector<8x1xf32>
    %16 = vector.broadcast %15 : vector<8x1xf32> to vector<8x8xf32>
    %17 = arith.subf %13, %16 : vector<8x8xf32>
    %18 = math.exp %17 : vector<8x8xf32>
    %cst_19 = arith.constant dense<0.000000e+00> : vector<8xf32>
    %19 = vector.multi_reduction <add>, %18, %cst_19 [1] : vector<8x8xf32> to vector<8xf32>
    %20 = vector.shape_cast %19 : vector<8xf32> to vector<8x1xf32>
    %cst_20 = arith.constant 1.000000e+00 : f32
    %21 = vector.broadcast %cst_20 : f32 to vector<8x1xf32>
    %22 = arith.divf %21, %20 : vector<8x1xf32>
    %23 = vector.broadcast %22 : vector<8x1xf32> to vector<8x8xf32>
    %24 = arith.mulf %18, %23 : vector<8x8xf32>
    %cst_21 = arith.constant dense<0.000000e+00> : vector<8x32xf32>
    %25 = tpu.matmul %24, %5, %cst_21 {dimension_numbers = #tpu.dot_dimension_numbers<[1], [0], [0], [1], [0, 0, 1, 1], [], []>} : vector<8x8xf32>, vector<8x32xf32>, vector<8x32xf32> -> vector<8x32xf32>
    %c0_22 = arith.constant 0 : index
    %c0_23 = arith.constant 0 : index
    %c0_24 = arith.constant 0 : index
    %c0_25 = arith.constant 0 : index
    %26 = vector.load %arg7[%c0_22, %c0_23, %c0_24, %c0_25] : memref<1x1x8x32xf32, #tpu.memory_space<vmem>>, vector<1x1x8x32xf32>
    %27 = vector.shape_cast %26 : vector<1x1x8x32xf32> to vector<8x32xf32>
    %28 = vector.shape_cast %25 : vector<8x32xf32> to vector<1x1x8x32xf32>
    tpu.vector_store %arg7[%c0_22, %c0_23, %c0_24, %c0_25], %28 {strides = array<i32>} : memref<1x1x8x32xf32, #tpu.memory_space<vmem>>, vector<1x1x8x32xf32>,
    %c0_26 = arith.constant 0 : index
    %c0_27 = arith.constant 0 : index
    %c0_28 = arith.constant 0 : index
    %c0_29 = arith.constant 0 : index
    %29 = vector.load %arg8[%c0_26, %c0_27, %c0_28, %c0_29] : memref<1x1x8x8xf32, #tpu.memory_space<vmem>>, vector<1x1x8x8xf32>
    %30 = vector.shape_cast %29 : vector<1x1x8x8xf32> to vector<8x8xf32>
    %31 = vector.shape_cast %24 : vector<8x8xf32> to vector<1x1x8x8xf32>
    tpu.vector_store %arg8[%c0_26, %c0_27, %c0_28, %c0_29], %31 {strides = array<i32>} : memref<1x1x8x8xf32, #tpu.memory_space<vmem>>, vector<1x1x8x8xf32>,
    return
  }
  func.func @transform_0(%arg0: i32, %arg1: i32, %arg2: i32) -> (i32, i32, i32, i32) {
    %c0_i32 = arith.constant 0 : i32
    %c0_i32_0 = arith.constant 0 : i32
    return %arg0, %arg1, %arg2, %c0_i32 : i32, i32, i32, i32
  }
  func.func @transform_1(%arg0: i32, %arg1: i32, %arg2: i32) -> (i32, i32, i32, i32) {
    %c0_i32 = arith.constant 0 : i32
    %c0_i32_0 = arith.constant 0 : i32
    %c0_i32_1 = arith.constant 0 : i32
    return %arg0, %arg1, %c0_i32, %c0_i32_0 : i32, i32, i32, i32
  }
  func.func @transform_2(%arg0: i32, %arg1: i32, %arg2: i32) -> (i32, i32, i32, i32) {
    %c0_i32 = arith.constant 0 : i32
    %c0_i32_0 = arith.constant 0 : i32
    %c0_i32_1 = arith.constant 0 : i32
    return %arg0, %arg1, %c0_i32, %c0_i32_0 : i32, i32, i32, i32
  }
  func.func @transform_3(%arg0: i32, %arg1: i32, %arg2: i32) -> (i32, i32, i32, i32) {
    %c0_i32 = arith.constant 0 : i32
    %c0_i32_0 = arith.constant 0 : i32
    return %arg0, %arg1, %arg2, %c0_i32 : i32, i32, i32, i32
  }
  func.func @transform_4(%arg0: i32, %arg1: i32, %arg2: i32) -> (i32, i32, i32, i32) {
    %c0_i32 = arith.constant 0 : i32
    %c0_i32_0 = arith.constant 0 : i32
    return %arg0, %arg1, %arg2, %c0_i32 : i32, i32, i32, i32
  }
  func.func @transform_5(%arg0: i32, %arg1: i32, %arg2: i32) -> (i32, i32, i32, i32) {
    %c0_i32 = arith.constant 0 : i32
    %c0_i32_0 = arith.constant 0 : i32
    return %arg0, %arg1, %arg2, %c0_i32 : i32, i32, i32, i32
  }
}

</mosaic_0001>

<bundles_post_ra>
// kernel: tpu_custom_call.1
= control target key start
LH: loop header
LB: loop body
LE: loop exit
PB: predicated region body
PF: predicated region fallthrough
CT: control target
= control target key end

     0   :  { %s1277_s0 = inlined_call_operand.vmem [shape: f32[2,2,8,32], index: 0, kind: input, shape index: {}]   ;;  %s1278_s1 = inlined_call_operand.hbm [shape: f32[2,2,8,32], index: 1, kind: input, shape index: {}]   ;;  %s1279_s2 = inlined_call_operand.hbm [shape: f32[2,2,8,32], index: 2, kind: input, shape index: {}]   ;;  %s1280_s3 = inlined_call_operand.vmem [shape: s32[2,2,8,8], index: 3, kind: input, shape index: {}]   ;;  %s1281_s4 = inlined_call_operand.hbm [shape: f32[2,2,8,32], index: 4, kind: output, shape index: {0}]   ;;  %s1282_s5 = inlined_call_operand.hbm [shape: f32[2,2,8,8], index: 5, kind: output, shape index: {1}]  }
   0x1   :  { %1286 = sst [smem:[#allocation17_spill]] %s1278_s1 }
   0x2   :  { %11 = vsyncpa [#allocation3], 0 }
   0x3   :  { %13 = vsyncpa [#allocation3 + $0x1], 0 }
   0x4   :  { %14 = vsyncpa [#allocation6], 0 }
   0x5   :  { %16 = vsyncpa [#allocation6 + $0x1], 0 }
   0x6   :  { %17 = vsyncpa [#allocation4], 0 }
   0x7   :  { %19 = vsyncpa [#allocation4 + $0x1], 0 }
   0x8   :  { %20 = vsyncpa [#allocation9], 0 }
   0x9   :  { %22 = vsyncpa [#allocation9 + $0x1], 0  ;;  %s1077_s18 = smov 0   ;;  %s1079_s19 = smov 0  }
   0xa   :  { %s1081_s20 = smov 0   ;;  %s1083_s21 = smov 0  }
   0xb   :  { %s1085_s22 = smov 0   ;;  %s1087_s23 = smov 0  }
   0xc   :  { %s1089_s24 = smov 0   ;;  %s1091_s25 = smov 0  }
   0xd LB: > { %1287 = sst [smem:[#allocation14_spill]] %s1041_s24  ;;  %s729_s26 = sadd.s32 4294967295, %s1045_s25   ;;  %s1045_s25 = sphi %s1091_s25, %s28_s25   ;;  %s1041_s24 = sphi %s1089_s24, %s1298_s24   ;;  %s1037_s23 = sphi %s1087_s23, %s1303_s23   ;;  %s1033_s22 = sphi %s1085_s22, %s1296_s22   ;;  %s1029_s21 = sphi %s1083_s21, %s1302_s21   ;;  %s1025_s20 = sphi %s1081_s20, %s1301_s20   ;;  %s1021_s19 = sphi %s1079_s19, %s1300_s19   ;;  %s1017_s18 = sphi %s1077_s18, %s1299_s18  }
   0xe   : > { %s730_s27 = sadd.s32 4294967294, %s1045_s25   ;;  %s43_s28 = sadd.s32 1, %s1037_s23 }
   0xf   : > { %s47_s29 = sadd.s32 1, %s1041_s24  ;;  %p45_p0 = scmp.ge.s32.totalorder %s43_s28, 2 }
  0x10   : > { %s86_s30 = sadd.s32 1, %s1025_s20  ;;  %p93_p1 = scmp.ne.s32.totalorder %s1025_s20, %s1021_s19 }
  0x11   : > { %p94_p2 = scmp.eq.s32.totalorder %s1045_s25, 0  ;;  %s1305_s28 = smov (%p45_p0, %s43_s28), 0 }
  0x12   : > { %1288 = sst [smem:[#allocation15_spill]] %s1305_s28  ;;  %s1307_s29 = smov (!%p45_p0, %s47_s29), %s1041_s24 }
  0x13   : > { %s82_s6 = ssub.s32 %s1037_s23, %s1305_s28  ;;  %p1130_p3 = por %p94_p2, %p93_p1 }
  0x14   : > { %p49_p4 = scmp.ge.s32.totalorder %s1307_s29, 2  ;;  %p99_p5 = scmp.ne.s32.totalorder %s1021_s19, %s1017_s18 }
  0x15   : > { %p100_p6 = scmp.eq.s32.totalorder %s729_s26, 0  ;;  %p185_p7 = scmp.eq.s32.totalorder %s729_s26, 3 }
  0x16   : > { %s1309_s29 = smov (%p49_p4, %s1307_s29), 0  ;;  %p191_p10 = scmp.eq.s32.totalorder %s730_s27, 3 }
  0x17   : > { %1290 = sst [smem:[#allocation16_spill]] %s1309_s29  ;;  %p1138_p8 = por %p100_p6, %p99_p5 }
  0x18   : > { %p1142_p9 = por %p185_p7, %p93_p1  ;;  %s81_s10 = ssub.s32 %s1041_s24, %s1309_s29 }
  0x19   : > { %s83_s11 = sor.u32 %s82_s6, %s81_s10  ;;  %p1148_p12 = por %p191_p10, %p99_p5 }
  0x1a   : > { %p84_p11 = scmp.eq.s32.totalorder %s83_s11, 0  ;;  %p781_p13 = scmp.lt.s32.totalorder %s1045_s25, 4 }
  0x1b   : > { %s255_s13 = sand.u32 1, %s1025_s20   ;;  %s734_s16 = sshll.u32 %s1041_s24, 1 }
  0x1c   : > { %s1155_s14 = scalar_select %p84_p11, %s1025_s20, %s86_s30  }
  0x1d   : > { %s733_s15 = sshll.u32 %s255_s13, 3  ;;  %s263_s17 = sadd.s32 %s1037_s23, %s734_s16 }
  0x1e   : > { %s259_s26 = scalar_lea.vmem [#allocation2], %s733_s15  ;;  %s735_s29 = sshll.u32 %s263_s17, 3 }
  0x1f   : > { %s269_s28 = sshll.u32 %s259_s26, 4  ;;  %s1294_s1 = sld [smem:[#allocation17_spill]]  ;;  %s270_s28 = int_to_ptr.vmem [resolvable:$true] %s269_s28 }
  0x20   : > { %p1164_p0 = pnand %p781_p13, %p1130_p3  ;;  %p739_p1 = scmp.ge.s32.totalorder %s1045_s25, 1 }
  0x21   : > { %s256_s24 = scalar_lea.sflag [#allocation3], %s255_s13  ;;  %p309_p2 = scmp.lt.s32.totalorder %s1045_s25, 5 }
  0x22   : > { %s286_s26 = scalar_lea.hbm %s1279_s2, %s735_s29  ;;  %s280_s7 = scalar_lea.vmem [#allocation5], %s733_s15 }
  0x23   : > { %p310_p4 = pnand %p739_p1, %p309_p2  ;;  %s288_s27 = sshll.u32 %s286_s26, 4  ;;  %s289_s27 = int_to_ptr.hbm [resolvable:$true] %s288_s27 }
  0x24   : > { %s290_s6 = sshll.u32 %s280_s7, 4  ;;  %s291_s6 = int_to_ptr.vmem [resolvable:$true] %s290_s6 }
  0x25   : > { %s265_s10 = scalar_lea.hbm %s1294_s1, %s735_s29  ;;  %s277_s1 = scalar_lea.sflag [#allocation6], %s255_s13 }
  0x26   : > { %s267_s30 = sshll.u32 %s265_s10, 4  ;;  %313 = sbr.rel (%p310_p4) target bundleno = 578 (0x242), region = 36  ;;  %s268_s30 = int_to_ptr.hbm [resolvable:$true] %s267_s30 }
  0x27   : > { %770 = dma.hbm_to_vmem [thread:$0]  (!%p1164_p0), %s268_s30, 128, %s270_s28, %s256_s24  }
  0x28   : > { %773 = dma.hbm_to_vmem [thread:$0]  (!%p1164_p0), %s289_s27, 128, %s291_s6, %s277_s1  }
  0x29   : > { %s1178_s10 = sand.u32 (!%p310_p4), 1, %s1021_s19  }
  0x2a   : > { %s1181_s24 = sshll.u32 (!%p310_p4), %s1178_s10, 3  ;;  %s316_s28 = scalar_lea.sflag (!%p310_p4), [#allocation3], %s1178_s10 }
  0x2b   : > { %s319_s29 = scalar_lea.vmem [#allocation2], %s1181_s24 }
  0x2c   : > { %1000 = dma.done.wait (%p1138_p8), %s316_s28, 128  }
  0x2d   : > { %1002 = vsyncadd (%p1138_p8), %s316_s28, 4294967168  ;;  %s326_s1 = scalar_lea.sflag [#allocation6], %s1178_s10  ;;  %s329_s13 = scalar_lea.vmem [#allocation5], %s1181_s24 }
  0x2e   : > { %1004 = dma.done.wait (%p1138_p8), %s326_s1, 128  }
  0x2f   : > { %1006 = vsyncadd (%p1138_p8), %s326_s1, 4294967168  ;;  %p389_p3 = scmp.lt.s32.totalorder %s1033_s22, 1  ;;  %p391_p5 = scmp.lt.s32.totalorder %s1029_s21, 1  ;;  %vm417_vm0 = vcmask 261120   ;;  %v412_v0 = vld [vmem:[%s319_s29] sm:$0xff]  ;;  %vm445_vm2 = vcmask 64512  }
  0x30   : > { %748 = vmatpush.xpose.msk.msra.mxu0 %vm417_vm0, %v412_v0  ;;  %v413_v12 = vld [vmem:[%s329_s13] sm:$0xff]  ;;  %s753_s29 = sshll.u32 %s1033_s22, 1  ;;  %s931_s6 = scalar_lea.hbm %s1282_s5, 32 }
  0x31   : > { %s390_s15 = scalar_select %p389_p3, %s1033_s22, 1  ;;  %489 = vmatpush.msra.mxu1 %v413_v12 }
  0x32   : > { %s392_s11 = scalar_select %p391_p5, %s1029_s21, 1 }
  0x33   : > { %s744_s30 = sshll.u32 %s390_s15, 1  ;;  %s1213_s1 = sadd.s32 %s1029_s21, %s753_s29 }
  0x34   : > { %s397_s16 = sadd.s32 %s744_s30, %s392_s11  ;;  %s754_s13 = sshll.u32 %s1213_s1, 3 }
  0x35   : > { %s745_s17 = sshll.u32 %s397_s16, 3  ;;  %s532_s30 = scalar_lea.hbm %s1282_s5, %s754_s13 }
  0x36   : > { %s399_s7 = scalar_lea.vmem %s1277_s0, %s745_s17  ;;  %s410_s28 = scalar_lea.vmem %s1280_s3, %s745_s17 }
  0x37   : > { %v411_v1 = vld [vmem:[%s399_s7] sm:$0xff]  ;;  %s388_s22 = scalar_lea.vmem [#allocation8], %s1181_s24  ;;  %s536_s16 = sshll.u32 %s532_s30, 4  ;;  %s537_s16 = int_to_ptr.hbm [resolvable:$true] %s536_s16 }
  0x38   : > { %v416_v2 = vmul.f32 0.17677669, %v411_v1  ;;  %v414_v3 = vld [vmem:[%s410_s28] sm:$0xff]  ;;  %s534_s21 = sshll.u32 %s388_s22, 4  ;;  %s502_s17 = scalar_lea.sflag [#allocation9], %s1178_s10  ;;  %s535_s21 = int_to_ptr.vmem [resolvable:$true] %s534_s21 }
  0x39   : > { %vm415_vm1 = vcmp.ne.s32.totalorder %v414_v3, 0  ;;  %s925_s26 = sshra.s32 %s537_s16, 4  ;;  %s926_s26 = int_to_ptr.hbm [resolvable:$true] %s925_s26 }
  0x3a   : > { %749 = vmatmul.msk.f32.vlgmr.msra.gmra.mxu0 %vm417_vm0, %v416_v2  ;;  %s927_s27 = scalar_lea.hbm %s926_s26, 8  ;;  %p932_p10 = scmp.lt.s32.totalorder %s926_s26, %s1282_s5 }
  0x3b   : > { %p928_p6 = scmp.ne.s32.totalorder %s926_s26, %s927_s27  ;;  %p933_p11 = scmp.lt.s32.totalorder %s931_s6, %s927_s27 }
  0x3d   : > { %p929_p7 = pnand %p928_p6, %p1142_p9  ;;  %p934_p13 = por %p933_p11, %p932_p10 }
  0x3f   : > { %p930_p8 = pneg %p929_p7 }
  0x41   : > { %p935_p0 = pnand %p934_p13, %p930_p8 }
  0xb7   : > { %v441_v4 = vpop.f32.mrf.mxu0 }
  0xb8   : > { %v444_v5 = vsel %vm415_vm1, -1e+09, %v441_v4 }
  0xb9   : > { %v446_v6 = vsel %vm445_vm2, %v444_v5, -inf }
  0xba   : > { %447 = vmax.xlane.f32.xlu0 %v446_v6 }
 0x12d   : > { %v448_v7 = vpop.xlane.xlu0 %447 }
 0x12e   : > { %v449_v8 = vsub.f32 %v444_v5, %v448_v7 }
 0x130   : > { %v450_v9 = vmul.f32 1.442695, %v449_v8 }
 0x132   : > { %847 = vpow2.f32 %v450_v9 }
 0x138   : > { %v848_v10 = vpop.eup %847 }
 0x139   : > { %v452_v11 = vsel %vm445_vm2, %v848_v10, 0.0 }
 0x13a   : > { %453 = vadd.xlane.f32.xlu0 %v452_v11 }
 0x1ad   : > { %v454_v13 = vpop.xlane.xlu0 %453 }
 0x1ae   : > { %849 = vrcp.f32 %v454_v13  ;;  %v466_v17 = vand.u32 2147483648, %v454_v13  ;;  %v464_v19 = vand.u32 2147483647, %v454_v13  ;;  %vm460_vm4 = vweird.f32 %v454_v13 }
 0x1b0   : > { %v467_v21 = vor.u32 1.1754944e-38, %v466_v17  ;;  %vm465_vm6 = vcmp.eq.f32.partialorder %v464_v19, 8.507059e+37 }
 0x1b4   : > { %v850_v14 = vpop.eup %849 }
 0x1b5   : > { %v456_v15 = vmul.f32 %v850_v14, %v454_v13  ;;  %vm461_vm3 = vweird.f32 %v850_v14 }
 0x1b6   : > { %vm462_vm5 = vmor %vm460_vm4, %vm461_vm3 }
 0x1b7   : > { %v457_v16 = vsub.f32 1.0, %v456_v15 }
 0x1b9   : > { %v458_v18 = vmul.f32 %v850_v14, %v457_v16 }
 0x1bb   : > { %v459_v20 = vadd.f32 %v850_v14, %v458_v18 }
 0x1bd   : > { %v463_v22 = vsel %vm462_vm5, %v850_v14, %v459_v20 }
 0x1be   : > { %v468_v23 = vsel %vm465_vm6, %v467_v21, %v463_v22 }
 0x1bf   : > { %v470_v24 = vmul.f32 %v848_v10, %v468_v23 }
 0x1c1   : > { %750 = vmatmul.msk.f32.vlgmr.msra.gmra.mxu1 %vm445_vm2, %v470_v24  ;;  %495 = vst.msk [vmem:[%s388_s22] sm:$0xff] %vm445_vm2, %v470_v24 }
 0x1c2   : > { %938 = shalt.err (!%p935_p0)
}
 0x1c3   : > { %764 = dma.vmem_to_hbm [thread:$0]  (%p1142_p9), %s535_s21, 128, %s537_s16, %s502_s17  }
 0x1c4   : > { %s515_s11 = scalar_lea.hbm %s1281_s4, %s754_s13  ;;  %s381_s30 = scalar_lea.vmem [#allocation7], %s1181_s24 }
 0x1c5   : > { %s517_s22 = sshll.u32 %s381_s30, 4  ;;  %s519_s7 = sshll.u32 %s515_s11, 4  ;;  %s518_s22 = int_to_ptr.vmem [resolvable:$true] %s517_s22  ;;  %s520_s7 = int_to_ptr.hbm [resolvable:$true] %s519_s7 }
 0x1c6   : > { %s497_s26 = scalar_lea.sflag [#allocation4], %s1178_s10  ;;  %s953_s27 = sshra.s32 %s520_s7, 4  ;;  %s954_s27 = int_to_ptr.hbm [resolvable:$true] %s953_s27 }
 0x1c7   : > { %s955_s8 = scalar_lea.hbm %s954_s27, 8  ;;  %s959_s13 = scalar_lea.hbm %s1281_s4, 32 }
 0x1c8   : > { %p956_p1 = scmp.ne.s32.totalorder %s954_s27, %s955_s8  ;;  %p960_p3 = scmp.lt.s32.totalorder %s954_s27, %s1281_s4 }
 0x1c9   : > { %p961_p5 = scmp.lt.s32.totalorder %s959_s13, %s955_s8 }
 0x1ca   : > { %p957_p2 = pnand %p956_p1, %p1142_p9 }
 0x1cb   : > { %p962_p6 = por %p961_p5, %p960_p3 }
 0x1cc   : > { %p958_p4 = pneg %p957_p2 }
 0x1ce   : > { %p963_p7 = pnand %p962_p6, %p958_p4 }
 0x23e   : > { %v491_v25 = vpop.f32.mrf.mxu1 }
 0x23f   : > { %494 = vst.msk [vmem:[%s381_s30] sm:$0xff] %vm417_vm0, %v491_v25 }
 0x240   : > { %966 = shalt.err (!%p963_p7)
}
 0x241   : > { %763 = dma.vmem_to_hbm [thread:$0]  (%p1142_p9), %s518_s22, 128, %s520_s7, %s497_s26  }
 0x242 PF: > { %p782_p8 = scmp.ge.s32.totalorder %s1045_s25, 2  ;;  %s548_s10 = sand.u32 1, %s1017_s18  }
 0x243   : > { %s549_s6 = scalar_lea.sflag [#allocation4], %s548_s10 }
 0x244   : > { %p775_p10 = pnand %p782_p8, %p1148_p12 }
 0x246   : > { %p776_p11 = pneg %p775_p10 }
 0x248   : > { %1008 = dma.done.wait (%p776_p11), %s549_s6, 128  }
 0x249   : > { %1010 = vsyncadd (%p776_p11), %s549_s6, 4294967168  ;;  %s559_s28 = scalar_lea.sflag [#allocation9], %s548_s10 }
 0x24a   : > { %1012 = dma.done.wait (%p776_p11), %s559_s28, 128  }
 0x24b   : > { %1014 = vsyncadd (%p776_p11), %s559_s28, 4294967168  ;;  %s28_s25 = sadd.s32 1, %s1045_s25   ;;  %s1296_s22 = sld [smem:[#allocation14_spill]] }
 0x24c   : > { %p25_p13 = scmp.ge.s32.totalorder %s28_s25, 6   ;;  %s1297_s9 = sld [smem:[#allocation15_spill]] }
 0x24d   : > { %s1298_s24 = sld [smem:[#allocation16_spill]]  ;;  %s1299_s18 = smov %s1021_s19 }
 0x24e   : > { %s1300_s19 = smov %s1025_s20  ;;  %s1301_s20 = smov %s1155_s14 }
 0x24f   : > { %s1302_s21 = smov %s1037_s23  ;;  %27 = sbr.rel (!%p25_p13) target bundleno = 13 (0xd), region = 117 }
 0x252   : > { %s1303_s23 = smov %s1297_s9 }
 0x254   :  { %565 = vsyncpa [#allocation3], 1 }
 0x255   :  { %567 = vsyncpa [#allocation3 + $0x1], 1 }
 0x256   :  { %568 = vsyncpa [#allocation6], 1 }
 0x257   :  { %570 = vsyncpa [#allocation6 + $0x1], 1 }
 0x258   :  { %571 = vsyncpa [#allocation4], 1 }
 0x259   :  { %573 = vsyncpa [#allocation4 + $0x1], 1 }
 0x25a   :  { %574 = vsyncpa [#allocation9], 1 }
 0x25b   :  { %576 = vsyncpa [#allocation9 + $0x1], 1 }

</bundles_post_ra>
